<compile_context>
chip_gen: v7x
topology: tpu7x:2x2x1
jax: 0.10.0
libtpu: 0.0.40
codegen_flags: <defaults>
</compile_context>

<pallas_src>
import math
import functools

import jax
import jax.numpy as jnp
from jax import lax
from jax.experimental import pallas as pl
from jax.experimental.pallas import tpu as pltpu


def _mha_kernel(vl_ref,                     # (Bt, Sq, 1) int32 valid key lengths
                q_ref, k_ref, v_ref,        # (Bt, Sq, Dq), (Bt, Sk, Dk), (Bt, Sk, Dv)
                wq_ref, wk_ref, wv_ref,     # (Dq, H), (Dk, H), (Dv, H)
                wo_ref,                     # (H, Hp)   lane-padded output projection
                out_ref,                    # (Bt, Sq, Hp)
                ctx_ref,                    # VMEM scratch (Bt, Sq, H) f32
                *, num_heads):
    bt, sq, dq = q_ref.shape
    _, sk, dk = k_ref.shape
    dv = v_ref.shape[2]
    hidden = wq_ref.shape[1]
    hp = wo_ref.shape[1]
    hd = hidden // num_heads
    scale = 1.0 / math.sqrt(hd)

    # Flatten (Bt, S) -> rows so the projections are (Bt*S, D) @ (D, H) MXU matmuls.
    # (S is a multiple of the 8-sublane tile, so these reshapes are layout no-ops.)
    q2 = q_ref[...].reshape(bt * sq, dq)
    k2 = k_ref[...].reshape(bt * sk, dk)
    v2 = v_ref[...].reshape(bt * sk, dv)

    # Pre-scale Q once instead of scaling every (Sq, Sk) score matrix per head.
    q_proj = (jnp.dot(q2, wq_ref[...], preferred_element_type=jnp.float32)
              * scale).reshape(bt, sq, hidden)
    k_proj = jnp.dot(k2, wk_ref[...],
                     preferred_element_type=jnp.float32).reshape(bt, sk, hidden)
    v_proj = jnp.dot(v2, wv_ref[...],
                     preferred_element_type=jnp.float32).reshape(bt, sk, hidden)

    # Key-validity mask, shared by all heads: key_idx < valid_len[b].
    key_idx = lax.broadcasted_iota(jnp.int32, (bt, sq, sk), 2)
    mask = key_idx < vl_ref[...]            # (Bt,Sq,Sk) vs (Bt,Sq,1): lane broadcast

    for h in range(num_heads):              # static loop; num_heads is small
        qh = q_proj[:, :, h * hd:(h + 1) * hd]      # (Bt, Sq, hd)
        kh = k_proj[:, :, h * hd:(h + 1) * hd]      # (Bt, Sk, hd)
        vh = v_proj[:, :, h * hd:(h + 1) * hd]      # (Bt, Sk, hd)

        # Batched over Bt, contracting the shared last dim (no explicit kh.T).
        scores = jnp.einsum("bqd,bkd->bqk", qh, kh,
                            preferred_element_type=jnp.float32)
        # sequence_mask semantics: padded-key scores are replaced with -1e6.
        scores = jnp.where(mask, scores, jnp.float32(-1000000.0))

        # Numerically-stable masked softmax over keys.
        m = jnp.max(scores, axis=-1, keepdims=True)
        e = jnp.exp(scores - m)
        denom = jnp.sum(e, axis=-1, keepdims=True)
        attn = e * pl.reciprocal(denom, approx=True)        # EUP reciprocal

        # Write this head's context directly into the concat slab (no jnp.concatenate).
        ctx_ref[:, :, h * hd:(h + 1) * hd] = jnp.einsum(
            "bqk,bkd->bqd", attn, vh, preferred_element_type=jnp.float32)

    # Output projection: one (Bt*Sq, H) @ (H, Hp) matmul; Hp is a multiple of 128
    # lanes so the final store is unmasked / lane-dense.
    concat = ctx_ref[...].reshape(bt * sq, hidden)
    out = jnp.dot(concat, wo_ref[...], preferred_element_type=jnp.float32)
    out_ref[...] = out.reshape(bt, sq, hp).astype(out_ref.dtype)


def multi_head_attention(queries, keys, values, valid_lens, params, num_heads,
                         *, block_b=None):
    """queries: (B, Sq, Dq), keys: (B, Sk, Dk), values: (B, Sk, Dv),
    valid_lens: (B,) int32 or None.  params: dict of pre-transposed weights."""
    B, Sq, Dq = queries.shape
    _, Sk, Dk = keys.shape
    _, _, Dv = values.shape
    H = params["W_q"].shape[1]
    assert H % num_heads == 0

    # Lane-dense output width (multiple of 128); sliced back to H afterwards.
    Hp = ((H + 127) // 128) * 128
    w_o = params["W_o"].astype(jnp.float32)
    if Hp != H:
        w_o = jnp.pad(w_o, ((0, 0), (0, Hp - H)))

    if valid_lens is None:
        valid_lens = jnp.full((B,), Sk, dtype=jnp.int32)
    # (B, Sq, 1) so the in-kernel mask is a cheap lane-broadcast compare.
    vl3 = jnp.broadcast_to(valid_lens.astype(jnp.int32)[:, None, None], (B, Sq, 1))

    if block_b is None:
        block_b = min(B, 8) if B % 8 == 0 else B
    assert B % block_b == 0

    kernel = functools.partial(_mha_kernel, num_heads=num_heads)

    grid_spec = pltpu.PrefetchScalarGridSpec(
        num_scalar_prefetch=0,
        grid=(B // block_b,),
        in_specs=[
            pl.BlockSpec((block_b, Sq, 1), lambda i: (i, 0, 0)),
            pl.BlockSpec((block_b, Sq, Dq), lambda i: (i, 0, 0)),
            pl.BlockSpec((block_b, Sk, Dk), lambda i: (i, 0, 0)),
            pl.BlockSpec((block_b, Sk, Dv), lambda i: (i, 0, 0)),
            # Weights: constant index maps (same block every grid step).
            pl.BlockSpec((Dq, H), lambda i: (0, 0)),
            pl.BlockSpec((Dk, H), lambda i: (0, 0)),
            pl.BlockSpec((Dv, H), lambda i: (0, 0)),
            pl.BlockSpec((H, Hp), lambda i: (0, 0)),
        ],
        out_specs=pl.BlockSpec((block_b, Sq, Hp), lambda i: (i, 0, 0)),
        scratch_shapes=[pltpu.VMEM((block_b, Sq, H), jnp.float32)],
    )

    out_p = pl.pallas_call(
        kernel,
        out_shape=jax.ShapeDtypeStruct((B, Sq, Hp), jnp.float32),
        grid_spec=grid_spec,
        compiler_params=pltpu.CompilerParams(
            dimension_semantics=("parallel",),
            vmem_limit_bytes=32 * 1024 * 1024),
    )(vl3, queries, keys, values,
      params["W_q"], params["W_k"], params["W_v"], w_o)

    return out_p if Hp == H else out_p[:, :, :H]


def _reference(queries, keys, values, valid_lens, params, num_heads):
    """Pure-JAX reference reproducing the PyTorch forward exactly."""
    def transpose_qkv(X):
        B, S, _ = X.shape
        X = X.reshape(B, S, num_heads, -1).transpose(0, 2, 1, 3)
        return X.reshape(-1, X.shape[2], X.shape[3])

    Q = transpose_qkv(queries @ params["W_q"])
    K = transpose_qkv(keys @ params["W_k"])
    V = transpose_qkv(values @ params["W_v"])
    vl = jnp.repeat(valid_lens, num_heads, axis=0)                     # (B*nh,)

    d = Q.shape[-1]
    scores = jnp.einsum("bqd,bkd->bqk", Q, K) / math.sqrt(d)
    key_idx = jnp.arange(scores.shape[-1])[None, None, :]
    scores = jnp.where(key_idx < vl[:, None, None], scores, -1000000.0)
    attn = jax.nn.softmax(scores, axis=-1)
    out = jnp.einsum("bqk,bkd->bqd", attn, V)                          # (B*nh, Sq, hd)

    Bnh, Sq, hd = out.shape
    out = out.reshape(-1, num_heads, Sq, hd).transpose(0, 2, 1, 3)
    out = out.reshape(out.shape[0], Sq, -1)
    return out @ params["W_o"]


if __name__ == "__main__":
    key = jax.random.PRNGKey(0)

    B, Sq, Sk = 2, 8, 8
    key_size = query_size = value_size = hidden_size = 32
    num_heads = 4

    ks = jax.random.split(key, 8)
    # Deterministic synthetic parameters, stored as (in_features, out_features).
    params = {
        "W_q": jax.random.normal(ks[0], (query_size, hidden_size), jnp.float32) * 0.1,
        "W_k": jax.random.normal(ks[1], (key_size, hidden_size), jnp.float32) * 0.1,
        "W_v": jax.random.normal(ks[2], (value_size, hidden_size), jnp.float32) * 0.1,
        "W_o": jax.random.normal(ks[3], (hidden_size, hidden_size), jnp.float32) * 0.1,
    }

    queries = jax.random.normal(ks[4], (B, Sq, query_size), jnp.float32)
    keys = jax.random.normal(ks[5], (B, Sk, key_size), jnp.float32)
    values = jax.random.normal(ks[6], (B, Sk, value_size), jnp.float32)
    valid_lens = jnp.array([3, 6], dtype=jnp.int32)

    out = multi_head_attention(queries, keys, values, valid_lens, params, num_heads)
    out = jax.block_until_ready(out)

    ref = _reference(queries, keys, values, valid_lens, params, num_heads)
    assert out.shape == (B, Sq, hidden_size)
    # approx=True softmax reciprocal introduces a small (<~1e-3) deviation vs f32.
    assert jnp.allclose(out, ref, atol=2e-3, rtol=2e-3), "mismatch vs reference"

    print("KERNEL_OK")
</pallas_src>

<mosaic_0001>
module attributes {stable_mosaic.version = 11 : i64} {
  func.func @_mha_kernel(%arg0: i32, %arg1: memref<2x8x1xi32, #tpu.memory_space<vmem>>, %arg2: memref<2x8x32xf32, #tpu.memory_space<vmem>>, %arg3: memref<2x8x32xf32, #tpu.memory_space<vmem>>, %arg4: memref<2x8x32xf32, #tpu.memory_space<vmem>>, %arg5: memref<32x32xf32, #tpu.memory_space<vmem>>, %arg6: memref<32x32xf32, #tpu.memory_space<vmem>>, %arg7: memref<32x32xf32, #tpu.memory_space<vmem>>, %arg8: memref<32x128xf32, #tpu.memory_space<vmem>>, %arg9: memref<2x8x128xf32, #tpu.memory_space<vmem>>, %arg10: memref<2x8x32xf32, #tpu.memory_space<vmem>>) attributes {dimension_semantics = [#tpu.dimension_semantics<parallel>], iteration_bounds = array<i64: 1>, scalar_prefetch = 0 : i64, scratch_operands = 1 : i64, tpu.core_type = #tpu.core_type<tc>, window_params = [{transform_indices = @transform_0, window_bounds = array<i64: 2, 8, 1>}, {transform_indices = @transform_1, window_bounds = array<i64: 2, 8, 32>}, {transform_indices = @transform_2, window_bounds = array<i64: 2, 8, 32>}, {transform_indices = @transform_3, window_bounds = array<i64: 2, 8, 32>}, {pipeline_mode = #tpu.pipeline_mode<synchronous>, transform_indices = @transform_4, window_bounds = array<i64: 32, 32>}, {pipeline_mode = #tpu.pipeline_mode<synchronous>, transform_indices = @transform_5, window_bounds = array<i64: 32, 32>}, {pipeline_mode = #tpu.pipeline_mode<synchronous>, transform_indices = @transform_6, window_bounds = array<i64: 32, 32>}, {pipeline_mode = #tpu.pipeline_mode<synchronous>, transform_indices = @transform_7, window_bounds = array<i64: 32, 128>}, {transform_indices = @transform_8, window_bounds = array<i64: 2, 8, 128>}]} {
    %c0 = arith.constant 0 : index
    %c0_0 = arith.constant 0 : index
    %c0_1 = arith.constant 0 : index
    %0 = vector.load %arg2[%c0, %c0_0, %c0_1] : memref<2x8x32xf32, #tpu.memory_space<vmem>>, vector<2x8x32xf32>
    %1 = vector.shape_cast %0 : vector<2x8x32xf32> to vector<16x32xf32>
    %c0_2 = arith.constant 0 : index
    %c0_3 = arith.constant 0 : index
    %c0_4 = arith.constant 0 : index
    %2 = vector.load %arg3[%c0_2, %c0_3, %c0_4] : memref<2x8x32xf32, #tpu.memory_space<vmem>>, vector<2x8x32xf32>
    %3 = vector.shape_cast %2 : vector<2x8x32xf32> to vector<16x32xf32>
    %c0_5 = arith.constant 0 : index
    %c0_6 = arith.constant 0 : index
    %c0_7 = arith.constant 0 : index
    %4 = vector.load %arg4[%c0_5, %c0_6, %c0_7] : memref<2x8x32xf32, #tpu.memory_space<vmem>>, vector<2x8x32xf32>
    %5 = vector.shape_cast %4 : vector<2x8x32xf32> to vector<16x32xf32>
    %c0_8 = arith.constant 0 : index
    %c0_9 = arith.constant 0 : index
    %6 = vector.load %arg5[%c0_8, %c0_9] : memref<32x32xf32, #tpu.memory_space<vmem>>, vector<32x32xf32>
    %cst = arith.constant dense<0.000000e+00> : vector<16x32xf32>
    %7 = tpu.matmul %1, %6, %cst {dimension_numbers = #tpu.dot_dimension_numbers<[1], [0], [0], [1], [0, 0, 1, 1], [], []>} : vector<16x32xf32>, vector<32x32xf32>, vector<16x32xf32> -> vector<16x32xf32>
    %cst_10 = arith.constant 0.353553385 : f32
    %8 = vector.broadcast %cst_10 : f32 to vector<16x32xf32>
    %9 = arith.mulf %7, %8 : vector<16x32xf32>
    %10 = vector.shape_cast %9 : vector<16x32xf32> to vector<2x8x32xf32>
    %c0_11 = arith.constant 0 : index
    %c0_12 = arith.constant 0 : index
    %11 = vector.load %arg6[%c0_11, %c0_12] : memref<32x32xf32, #tpu.memory_space<vmem>>, vector<32x32xf32>
    %cst_13 = arith.constant dense<0.000000e+00> : vector<16x32xf32>
    %12 = tpu.matmul %3, %11, %cst_13 {dimension_numbers = #tpu.dot_dimension_numbers<[1], [0], [0], [1], [0, 0, 1, 1], [], []>} : vector<16x32xf32>, vector<32x32xf32>, vector<16x32xf32> -> vector<16x32xf32>
    %13 = vector.shape_cast %12 : vector<16x32xf32> to vector<2x8x32xf32>
    %c0_14 = arith.constant 0 : index
    %c0_15 = arith.constant 0 : index
    %14 = vector.load %arg7[%c0_14, %c0_15] : memref<32x32xf32, #tpu.memory_space<vmem>>, vector<32x32xf32>
    %cst_16 = arith.constant dense<0.000000e+00> : vector<16x32xf32>
    %15 = tpu.matmul %5, %14, %cst_16 {dimension_numbers = #tpu.dot_dimension_numbers<[1], [0], [0], [1], [0, 0, 1, 1], [], []>} : vector<16x32xf32>, vector<32x32xf32>, vector<16x32xf32> -> vector<16x32xf32>
    %16 = vector.shape_cast %15 : vector<16x32xf32> to vector<2x8x32xf32>
    %17 = tpu.iota {dimensions = array<i32: 2>} : vector<2x8x8xi32>
    %c0_17 = arith.constant 0 : index
    %c0_18 = arith.constant 0 : index
    %c0_19 = arith.constant 0 : index
    %18 = vector.load %arg1[%c0_17, %c0_18, %c0_19] : memref<2x8x1xi32, #tpu.memory_space<vmem>>, vector<2x8x1xi32>
    %19 = vector.broadcast %18 : vector<2x8x1xi32> to vector<2x8x8xi32>
    %20 = arith.cmpi slt, %17, %19 : vector<2x8x8xi32>
    %21 = vector.extract_strided_slice %10 {offsets = [0, 0, 0], sizes = [2, 8, 8], strides = [1, 1, 1]} : vector<2x8x32xf32> to vector<2x8x8xf32>
    %22 = vector.extract_strided_slice %13 {offsets = [0, 0, 0], sizes = [2, 8, 8], strides = [1, 1, 1]} : vector<2x8x32xf32> to vector<2x8x8xf32>
    %23 = vector.extract_strided_slice %16 {offsets = [0, 0, 0], sizes = [2, 8, 8], strides = [1, 1, 1]} : vector<2x8x32xf32> to vector<2x8x8xf32>
    "tpu.trace_start"() <{level = 10 : i32, message = "bqd,bkd->bqk"}> : () -> ()
    %cst_20 = arith.constant dense<0.000000e+00> : vector<2x8x8xf32>
    %24 = tpu.matmul %21, %22, %cst_20 {dimension_numbers = #tpu.dot_dimension_numbers<[2], [2], [1], [1], [0, 0, 0, 1, 1, 1], [0], [0]>} : vector<2x8x8xf32>, vector<2x8x8xf32>, vector<2x8x8xf32> -> vector<2x8x8xf32>
    %cst_21 = arith.constant -1.000000e+06 : f32
    "tpu.trace_stop"() : () -> ()
    %25 = vector.broadcast %cst_21 : f32 to vector<2x8x8xf32>
    %26 = arith.select %20, %24, %25 : vector<2x8x8xi1>, vector<2x8x8xf32>
    %cst_22 = arith.constant dense<0xFF800000> : vector<2x8xf32>
    %27 = vector.multi_reduction <maximumf>, %26, %cst_22 [2] : vector<2x8x8xf32> to vector<2x8xf32>
    %28 = vector.shape_cast %27 : vector<2x8xf32> to vector<2x8x1xf32>
    %29 = vector.broadcast %28 : vector<2x8x1xf32> to vector<2x8x8xf32>
    %30 = arith.subf %26, %29 : vector<2x8x8xf32>
    %31 = math.exp %30 : vector<2x8x8xf32>
    %cst_23 = arith.constant dense<0.000000e+00> : vector<2x8xf32>
    %32 = vector.multi_reduction <add>, %31, %cst_23 [2] : vector<2x8x8xf32> to vector<2x8xf32>
    %33 = vector.shape_cast %32 : vector<2x8xf32> to vector<2x8x1xf32>
    %34 = tpu.reciprocal %33 {approx = true} : vector<2x8x1xf32> -> vector<2x8x1xf32>
    %35 = vector.broadcast %34 : vector<2x8x1xf32> to vector<2x8x8xf32>
    %36 = arith.mulf %31, %35 : vector<2x8x8xf32>
    "tpu.trace_start"() <{level = 10 : i32, message = "bqk,bkd->bqd"}> : () -> ()
    %cst_24 = arith.constant dense<0.000000e+00> : vector<2x8x8xf32>
    %37 = tpu.matmul %36, %23, %cst_24 {dimension_numbers = #tpu.dot_dimension_numbers<[2], [1], [1], [2], [0, 0, 0, 1, 1, 2], [0], [0]>} : vector<2x8x8xf32>, vector<2x8x8xf32>, vector<2x8x8xf32> -> vector<2x8x8xf32>
    "tpu.trace_stop"() : () -> ()
    %c0_25 = arith.constant 0 : index
    %c0_26 = arith.constant 0 : index
    %c0_27 = arith.constant 0 : index
    %38 = vector.load %arg10[%c0_25, %c0_26, %c0_27] : memref<2x8x32xf32, #tpu.memory_space<vmem>>, vector<2x8x8xf32>
    tpu.vector_store %arg10[%c0_25, %c0_26, %c0_27], %37 {strides = array<i32>} : memref<2x8x32xf32, #tpu.memory_space<vmem>>, vector<2x8x8xf32>,
    %39 = vector.extract_strided_slice %10 {offsets = [0, 0, 8], sizes = [2, 8, 8], strides = [1, 1, 1]} : vector<2x8x32xf32> to vector<2x8x8xf32>
    %40 = vector.extract_strided_slice %13 {offsets = [0, 0, 8], sizes = [2, 8, 8], strides = [1, 1, 1]} : vector<2x8x32xf32> to vector<2x8x8xf32>
    %41 = vector.extract_strided_slice %16 {offsets = [0, 0, 8], sizes = [2, 8, 8], strides = [1, 1, 1]} : vector<2x8x32xf32> to vector<2x8x8xf32>
    "tpu.trace_start"() <{level = 10 : i32, message = "bqd,bkd->bqk"}> : () -> ()
    %cst_28 = arith.constant dense<0.000000e+00> : vector<2x8x8xf32>
    %42 = tpu.matmul %39, %40, %cst_28 {dimension_numbers = #tpu.dot_dimension_numbers<[2], [2], [1], [1], [0, 0, 0, 1, 1, 1], [0], [0]>} : vector<2x8x8xf32>, vector<2x8x8xf32>, vector<2x8x8xf32> -> vector<2x8x8xf32>
    %cst_29 = arith.constant -1.000000e+06 : f32
    "tpu.trace_stop"() : () -> ()
    %43 = vector.broadcast %cst_29 : f32 to vector<2x8x8xf32>
    %44 = arith.select %20, %42, %43 : vector<2x8x8xi1>, vector<2x8x8xf32>
    %cst_30 = arith.constant dense<0xFF800000> : vector<2x8xf32>
    %45 = vector.multi_reduction <maximumf>, %44, %cst_30 [2] : vector<2x8x8xf32> to vector<2x8xf32>
    %46 = vector.shape_cast %45 : vector<2x8xf32> to vector<2x8x1xf32>
    %47 = vector.broadcast %46 : vector<2x8x1xf32> to vector<2x8x8xf32>
    %48 = arith.subf %44, %47 : vector<2x8x8xf32>
    %49 = math.exp %48 : vector<2x8x8xf32>
    %cst_31 = arith.constant dense<0.000000e+00> : vector<2x8xf32>
    %50 = vector.multi_reduction <add>, %49, %cst_31 [2] : vector<2x8x8xf32> to vector<2x8xf32>
    %51 = vector.shape_cast %50 : vector<2x8xf32> to vector<2x8x1xf32>
    %52 = tpu.reciprocal %51 {approx = true} : vector<2x8x1xf32> -> vector<2x8x1xf32>
    %53 = vector.broadcast %52 : vector<2x8x1xf32> to vector<2x8x8xf32>
    %54 = arith.mulf %49, %53 : vector<2x8x8xf32>
    "tpu.trace_start"() <{level = 10 : i32, message = "bqk,bkd->bqd"}> : () -> ()
    %cst_32 = arith.constant dense<0.000000e+00> : vector<2x8x8xf32>
    %55 = tpu.matmul %54, %41, %cst_32 {dimension_numbers = #tpu.dot_dimension_numbers<[2], [1], [1], [2], [0, 0, 0, 1, 1, 2], [0], [0]>} : vector<2x8x8xf32>, vector<2x8x8xf32>, vector<2x8x8xf32> -> vector<2x8x8xf32>
    "tpu.trace_stop"() : () -> ()
    %c0_33 = arith.constant 0 : index
    %c0_34 = arith.constant 0 : index
    %c8 = arith.constant 8 : index
    %56 = vector.load %arg10[%c0_33, %c0_34, %c8] : memref<2x8x32xf32, #tpu.memory_space<vmem>>, vector<2x8x8xf32>
    tpu.vector_store %arg10[%c0_33, %c0_34, %c8], %55 {strides = array<i32>} : memref<2x8x32xf32, #tpu.memory_space<vmem>>, vector<2x8x8xf32>,
    %57 = vector.extract_strided_slice %10 {offsets = [0, 0, 16], sizes = [2, 8, 8], strides = [1, 1, 1]} : vector<2x8x32xf32> to vector<2x8x8xf32>
    %58 = vector.extract_strided_slice %13 {offsets = [0, 0, 16], sizes = [2, 8, 8], strides = [1, 1, 1]} : vector<2x8x32xf32> to vector<2x8x8xf32>
    %59 = vector.extract_strided_slice %16 {offsets = [0, 0, 16], sizes = [2, 8, 8], strides = [1, 1, 1]} : vector<2x8x32xf32> to vector<2x8x8xf32>
    "tpu.trace_start"() <{level = 10 : i32, message = "bqd,bkd->bqk"}> : () -> ()
    %cst_35 = arith.constant dense<0.000000e+00> : vector<2x8x8xf32>
    %60 = tpu.matmul %57, %58, %cst_35 {dimension_numbers = #tpu.dot_dimension_numbers<[2], [2], [1], [1], [0, 0, 0, 1, 1, 1], [0], [0]>} : vector<2x8x8xf32>, vector<2x8x8xf32>, vector<2x8x8xf32> -> vector<2x8x8xf32>
    %cst_36 = arith.constant -1.000000e+06 : f32
    "tpu.trace_stop"() : () -> ()
    %61 = vector.broadcast %cst_36 : f32 to vector<2x8x8xf32>
    %62 = arith.select %20, %60, %61 : vector<2x8x8xi1>, vector<2x8x8xf32>
    %cst_37 = arith.constant dense<0xFF800000> : vector<2x8xf32>
    %63 = vector.multi_reduction <maximumf>, %62, %cst_37 [2] : vector<2x8x8xf32> to vector<2x8xf32>
    %64 = vector.shape_cast %63 : vector<2x8xf32> to vector<2x8x1xf32>
    %65 = vector.broadcast %64 : vector<2x8x1xf32> to vector<2x8x8xf32>
    %66 = arith.subf %62, %65 : vector<2x8x8xf32>
    %67 = math.exp %66 : vector<2x8x8xf32>
    %cst_38 = arith.constant dense<0.000000e+00> : vector<2x8xf32>
    %68 = vector.multi_reduction <add>, %67, %cst_38 [2] : vector<2x8x8xf32> to vector<2x8xf32>
    %69 = vector.shape_cast %68 : vector<2x8xf32> to vector<2x8x1xf32>
    %70 = tpu.reciprocal %69 {approx = true} : vector<2x8x1xf32> -> vector<2x8x1xf32>
    %71 = vector.broadcast %70 : vector<2x8x1xf32> to vector<2x8x8xf32>
    %72 = arith.mulf %67, %71 : vector<2x8x8xf32>
    "tpu.trace_start"() <{level = 10 : i32, message = "bqk,bkd->bqd"}> : () -> ()
    %cst_39 = arith.constant dense<0.000000e+00> : vector<2x8x8xf32>
    %73 = tpu.matmul %72, %59, %cst_39 {dimension_numbers = #tpu.dot_dimension_numbers<[2], [1], [1], [2], [0, 0, 0, 1, 1, 2], [0], [0]>} : vector<2x8x8xf32>, vector<2x8x8xf32>, vector<2x8x8xf32> -> vector<2x8x8xf32>
    "tpu.trace_stop"() : () -> ()
    %c0_40 = arith.constant 0 : index
    %c0_41 = arith.constant 0 : index
    %c16 = arith.constant 16 : index
    %74 = vector.load %arg10[%c0_40, %c0_41, %c16] : memref<2x8x32xf32, #tpu.memory_space<vmem>>, vector<2x8x8xf32>
    tpu.vector_store %arg10[%c0_40, %c0_41, %c16], %73 {strides = array<i32>} : memref<2x8x32xf32, #tpu.memory_space<vmem>>, vector<2x8x8xf32>,
    %75 = vector.extract_strided_slice %10 {offsets = [0, 0, 24], sizes = [2, 8, 8], strides = [1, 1, 1]} : vector<2x8x32xf32> to vector<2x8x8xf32>
    %76 = vector.extract_strided_slice %13 {offsets = [0, 0, 24], sizes = [2, 8, 8], strides = [1, 1, 1]} : vector<2x8x32xf32> to vector<2x8x8xf32>
    %77 = vector.extract_strided_slice %16 {offsets = [0, 0, 24], sizes = [2, 8, 8], strides = [1, 1, 1]} : vector<2x8x32xf32> to vector<2x8x8xf32>
    "tpu.trace_start"() <{level = 10 : i32, message = "bqd,bkd->bqk"}> : () -> ()
    %cst_42 = arith.constant dense<0.000000e+00> : vector<2x8x8xf32>
    %78 = tpu.matmul %75, %76, %cst_42 {dimension_numbers = #tpu.dot_dimension_numbers<[2], [2], [1], [1], [0, 0, 0, 1, 1, 1], [0], [0]>} : vector<2x8x8xf32>, vector<2x8x8xf32>, vector<2x8x8xf32> -> vector<2x8x8xf32>
    %cst_43 = arith.constant -1.000000e+06 : f32
    "tpu.trace_stop"() : () -> ()
    %79 = vector.broadcast %cst_43 : f32 to vector<2x8x8xf32>
    %80 = arith.select %20, %78, %79 : vector<2x8x8xi1>, vector<2x8x8xf32>
    %cst_44 = arith.constant dense<0xFF800000> : vector<2x8xf32>
    %81 = vector.multi_reduction <maximumf>, %80, %cst_44 [2] : vector<2x8x8xf32> to vector<2x8xf32>
    %82 = vector.shape_cast %81 : vector<2x8xf32> to vector<2x8x1xf32>
    %83 = vector.broadcast %82 : vector<2x8x1xf32> to vector<2x8x8xf32>
    %84 = arith.subf %80, %83 : vector<2x8x8xf32>
    %85 = math.exp %84 : vector<2x8x8xf32>
    %cst_45 = arith.constant dense<0.000000e+00> : vector<2x8xf32>
    %86 = vector.multi_reduction <add>, %85, %cst_45 [2] : vector<2x8x8xf32> to vector<2x8xf32>
    %87 = vector.shape_cast %86 : vector<2x8xf32> to vector<2x8x1xf32>
    %88 = tpu.reciprocal %87 {approx = true} : vector<2x8x1xf32> -> vector<2x8x1xf32>
    %89 = vector.broadcast %88 : vector<2x8x1xf32> to vector<2x8x8xf32>
    %90 = arith.mulf %85, %89 : vector<2x8x8xf32>
    "tpu.trace_start"() <{level = 10 : i32, message = "bqk,bkd->bqd"}> : () -> ()
    %cst_46 = arith.constant dense<0.000000e+00> : vector<2x8x8xf32>
    %91 = tpu.matmul %90, %77, %cst_46 {dimension_numbers = #tpu.dot_dimension_numbers<[2], [1], [1], [2], [0, 0, 0, 1, 1, 2], [0], [0]>} : vector<2x8x8xf32>, vector<2x8x8xf32>, vector<2x8x8xf32> -> vector<2x8x8xf32>
    "tpu.trace_stop"() : () -> ()
    %c0_47 = arith.constant 0 : index
    %c0_48 = arith.constant 0 : index
    %c24 = arith.constant 24 : index
    %92 = vector.load %arg10[%c0_47, %c0_48, %c24] : memref<2x8x32xf32, #tpu.memory_space<vmem>>, vector<2x8x8xf32>
    tpu.vector_store %arg10[%c0_47, %c0_48, %c24], %91 {strides = array<i32>} : memref<2x8x32xf32, #tpu.memory_space<vmem>>, vector<2x8x8xf32>,
    %c0_49 = arith.constant 0 : index
    %c0_50 = arith.constant 0 : index
    %c0_51 = arith.constant 0 : index
    %93 = vector.load %arg10[%c0_49, %c0_50, %c0_51] : memref<2x8x32xf32, #tpu.memory_space<vmem>>, vector<2x8x32xf32>
    %94 = vector.shape_cast %93 : vector<2x8x32xf32> to vector<16x32xf32>
    %c0_52 = arith.constant 0 : index
    %c0_53 = arith.constant 0 : index
    %95 = vector.load %arg8[%c0_52, %c0_53] : memref<32x128xf32, #tpu.memory_space<vmem>>, vector<32x128xf32>
    %cst_54 = arith.constant dense<0.000000e+00> : vector<16x128xf32>
    %96 = tpu.matmul %94, %95, %cst_54 {dimension_numbers = #tpu.dot_dimension_numbers<[1], [0], [0], [1], [0, 0, 1, 1], [], []>} : vector<16x32xf32>, vector<32x128xf32>, vector<16x128xf32> -> vector<16x128xf32>
    %97 = vector.shape_cast %96 : vector<16x128xf32> to vector<2x8x128xf32>
    %c0_55 = arith.constant 0 : index
    %c0_56 = arith.constant 0 : index
    %c0_57 = arith.constant 0 : index
    %98 = vector.load %arg9[%c0_55, %c0_56, %c0_57] : memref<2x8x128xf32, #tpu.memory_space<vmem>>, vector<2x8x128xf32>
    tpu.vector_store %arg9[%c0_55, %c0_56, %c0_57], %97 {strides = array<i32>} : memref<2x8x128xf32, #tpu.memory_space<vmem>>, vector<2x8x128xf32>,
    return
  }
  func.func @transform_0(%arg0: i32) -> (i32, i32, i32) {
    %c0_i32 = arith.constant 0 : i32
    %c0_i32_0 = arith.constant 0 : i32
    %c0_i32_1 = arith.constant 0 : i32
    return %arg0, %c0_i32, %c0_i32_0 : i32, i32, i32
  }
  func.func @transform_1(%arg0: i32) -> (i32, i32, i32) {
    %c0_i32 = arith.constant 0 : i32
    %c0_i32_0 = arith.constant 0 : i32
    %c0_i32_1 = arith.constant 0 : i32
    return %arg0, %c0_i32, %c0_i32_0 : i32, i32, i32
  }
  func.func @transform_2(%arg0: i32) -> (i32, i32, i32) {
    %c0_i32 = arith.constant 0 : i32
    %c0_i32_0 = arith.constant 0 : i32
    %c0_i32_1 = arith.constant 0 : i32
    return %arg0, %c0_i32, %c0_i32_0 : i32, i32, i32
  }
  func.func @transform_3(%arg0: i32) -> (i32, i32, i32) {
    %c0_i32 = arith.constant 0 : i32
    %c0_i32_0 = arith.constant 0 : i32
    %c0_i32_1 = arith.constant 0 : i32
    return %arg0, %c0_i32, %c0_i32_0 : i32, i32, i32
  }
  func.func @transform_4(%arg0: i32) -> (i32, i32) {
    %c0_i32 = arith.constant 0 : i32
    %c0_i32_0 = arith.constant 0 : i32
    %c0_i32_1 = arith.constant 0 : i32
    return %c0_i32, %c0_i32_0 : i32, i32
  }
  func.func @transform_5(%arg0: i32) -> (i32, i32) {
    %c0_i32 = arith.constant 0 : i32
    %c0_i32_0 = arith.constant 0 : i32
    %c0_i32_1 = arith.constant 0 : i32
    return %c0_i32, %c0_i32_0 : i32, i32
  }
  func.func @transform_6(%arg0: i32) -> (i32, i32) {
    %c0_i32 = arith.constant 0 : i32
    %c0_i32_0 = arith.constant 0 : i32
    %c0_i32_1 = arith.constant 0 : i32
    return %c0_i32, %c0_i32_0 : i32, i32
  }
  func.func @transform_7(%arg0: i32) -> (i32, i32) {
    %c0_i32 = arith.constant 0 : i32
    %c0_i32_0 = arith.constant 0 : i32
    %c0_i32_1 = arith.constant 0 : i32
    return %c0_i32, %c0_i32_0 : i32, i32
  }
  func.func @transform_8(%arg0: i32) -> (i32, i32, i32) {
    %c0_i32 = arith.constant 0 : i32
    %c0_i32_0 = arith.constant 0 : i32
    %c0_i32_1 = arith.constant 0 : i32
    return %arg0, %c0_i32, %c0_i32_0 : i32, i32, i32
  }
}

</mosaic_0001>

<bundles_post_ra>
// kernel: tpu_custom_call.1
= control target key start
LH: loop header
LB: loop body
LE: loop exit
PB: predicated region body
PF: predicated region fallthrough
CT: control target
= control target key end

     0   :  { %13 = vsyncpa [#allocation4], 0  ;;  %s2717_s0 = inlined_call_operand.vmem [shape: s32[2,8,1], index: 0, kind: input, shape index: {}]   ;;  %s2718_s1 = inlined_call_operand.hbm [shape: f32[2,8,32], index: 1, kind: input, shape index: {}]   ;;  %s2719_s2 = inlined_call_operand.hbm [shape: f32[2,8,32], index: 2, kind: input, shape index: {}]   ;;  %s2720_s3 = inlined_call_operand.hbm [shape: f32[2,8,32], index: 3, kind: input, shape index: {}]   ;;  %s2721_s4 = inlined_call_operand.vmem [shape: f32[32,32], index: 4, kind: input, shape index: {}]   ;;  %s2722_s5 = inlined_call_operand.hbm [shape: f32[32,32], index: 5, kind: input, shape index: {}]   ;;  %s2723_s6 = inlined_call_operand.hbm [shape: f32[32,32], index: 6, kind: input, shape index: {}]   ;;  %s2724_s7 = inlined_call_operand.hbm [shape: f32[32,128], index: 7, kind: input, shape index: {}]   ;;  %s2725_s8 = inlined_call_operand.hbm [shape: f32[2,8,128], index: 8, kind: output, shape index: {}]  }
   0x1   :  { %14 = vsyncpa [#allocation7], 0 }
   0x2   :  { %15 = vsyncpa [#allocation10], 0 }
   0x3   :  { %16 = vsyncpa [#allocation13], 0 }
   0x4   :  { %17 = vsyncpa [#allocation5], 0  ;;  %s2311_s27 = smov [#allocation6]   ;;  %s2312_s29 = smov [#allocation9]  }
   0x5   :  { %s37_s28 = sshll.u32 %s2311_s27, 4  ;;  %s63_s30 = sshll.u32 %s2312_s29, 4  ;;  %s38_s28 = int_to_ptr.vmem [resolvable:$true] %s37_s28  ;;  %s2373_s30 = int_to_ptr.vmem [resolvable:$true] %s63_s30 }
   0x6   :  { %s2147_s11 = scalar_lea.hbm %s2719_s2, 256 }
   0x7   :  { %p2148_p0 = scmp.ne.s32.totalorder %s2719_s2, %s2147_s11  ;;  %p2151_p1 = scmp.lt.u32.totalorder %s2147_s11, %s2719_s2 }
   0x9   :  { %p2153_p2 = pnand %p2151_p1, %p2148_p0 }
   0xb   :  { %2156 = shalt.err (!%p2153_p2)
}
   0xc   :  { %s2157_s16 = scalar_lea.vmem %s38_s28, 256  ;;  %p2162_p4 = scmp.lt.s32.totalorder %s38_s28, %s38_s28 }
   0xd   :  { %p2158_p3 = scmp.ne.s32.totalorder %s38_s28, %s2157_s16  ;;  %p2163_p5 = scmp.lt.s32.totalorder %s2157_s16, %s2157_s16 }
   0xf   :  { %p2164_p6 = por %p2163_p5, %p2162_p4 }
  0x11   :  { %p2165_p7 = pnand %p2164_p6, %p2158_p3 }
  0x13   :  { %2168 = shalt.err (!%p2165_p7)
}
  0x14   :  { %s2313_s17 = smov 128   ;;  %s2314_s18 = smov 8  }
  0x15   :  { %43 = dma.hbm_to_vmem [thread:$0]  %s2719_s2, 256, %s38_s28, [#allocation7], %s2313_s17, %s2313_s17, %s2314_s18  }
  0x16   :  { %s2169_s23 = scalar_lea.hbm %s2722_s5, 512 }
  0x17   :  { %p2170_p8 = scmp.ne.s32.totalorder %s2722_s5, %s2169_s23  ;;  %p2173_p9 = scmp.lt.u32.totalorder %s2169_s23, %s2722_s5 }
  0x19   :  { %p2175_p10 = pnand %p2173_p9, %p2170_p8 }
  0x1b   :  { %2178 = shalt.err (!%p2175_p10)
}
  0x1c   :  { %s2179_s29 = scalar_lea.vmem %s2373_s30, 512  ;;  %p2184_p12 = scmp.lt.s32.totalorder %s2373_s30, %s2373_s30 }
  0x1d   :  { %p2180_p11 = scmp.ne.s32.totalorder %s2373_s30, %s2179_s29  ;;  %p2185_p13 = scmp.lt.s32.totalorder %s2179_s29, %s2179_s29 }
  0x1f   :  { %p2186_p0 = por %p2185_p13, %p2184_p12 }
  0x21   :  { %p2187_p1 = pnand %p2186_p0, %p2180_p11 }
  0x23   :  { %2190 = shalt.err (!%p2187_p1)
}
  0x24   :  { %69 = dma.hbm_to_vmem [thread:$0]  %s2722_s5, 512, %s2373_s30, [#allocation10], %s2313_s17, %s2313_s17, %s2314_s18  }
  0x25   :  { %s2315_s9 = smov [#allocation3]   ;;  %s2316_s11 = smov [#allocation8]  }
  0x26   :  { %s25_s10 = sshll.u32 %s2315_s9, 4  ;;  %s49_s12 = sshll.u32 %s2316_s11, 4  ;;  %s26_s10 = int_to_ptr.vmem [resolvable:$true] %s25_s10  ;;  %s2410_s12 = int_to_ptr.vmem [resolvable:$true] %s49_s12 }
  0x27   :  { %s2191_s15 = scalar_lea.hbm %s2718_s1, 256 }
  0x28   :  { %p2192_p2 = scmp.ne.s32.totalorder %s2718_s1, %s2191_s15  ;;  %p2195_p3 = scmp.lt.u32.totalorder %s2191_s15, %s2718_s1 }
  0x2a   :  { %p2197_p4 = pnand %p2195_p3, %p2192_p2 }
  0x2c   :  { %2200 = shalt.err (!%p2197_p4)
}
  0x2d   :  { %s2201_s5 = scalar_lea.vmem %s26_s10, 256  ;;  %p2206_p6 = scmp.lt.s32.totalorder %s26_s10, %s26_s10 }
  0x2e   :  { %p2202_p5 = scmp.ne.s32.totalorder %s26_s10, %s2201_s5  ;;  %p2207_p7 = scmp.lt.s32.totalorder %s2201_s5, %s2201_s5 }
  0x30   :  { %p2208_p8 = por %p2207_p7, %p2206_p6 }
  0x32   :  { %p2209_p9 = pnand %p2208_p8, %p2202_p5 }
  0x34   :  { %2212 = shalt.err (!%p2209_p9)
}
  0x35   :  { %31 = dma.hbm_to_vmem [thread:$0]  %s2718_s1, 256, %s26_s10, [#allocation4], %s2313_s17, %s2313_s17, %s2314_s18  }
  0x36   :  { %s2213_s25 = scalar_lea.hbm %s2720_s3, 256 }
  0x37   :  { %p2214_p10 = scmp.ne.s32.totalorder %s2720_s3, %s2213_s25  ;;  %p2217_p11 = scmp.lt.u32.totalorder %s2213_s25, %s2720_s3 }
  0x39   :  { %p2219_p12 = pnand %p2217_p11, %p2214_p10 }
  0x3b   :  { %2222 = shalt.err (!%p2219_p12)
}
  0x3c   :  { %s2223_s28 = scalar_lea.vmem %s2410_s12, 256  ;;  %p2228_p0 = scmp.lt.s32.totalorder %s2410_s12, %s2410_s12 }
  0x3d   :  { %p2224_p13 = scmp.ne.s32.totalorder %s2410_s12, %s2223_s28  ;;  %p2229_p1 = scmp.lt.s32.totalorder %s2223_s28, %s2223_s28 }
  0x3f   :  { %p2230_p2 = por %p2229_p1, %p2228_p0 }
  0x41   :  { %p2231_p3 = pnand %p2230_p2, %p2224_p13 }
  0x43   :  { %2234 = shalt.err (!%p2231_p3)
}
  0x44   :  { %55 = dma.hbm_to_vmem [thread:$0]  %s2720_s3, 256, %s2410_s12, [#allocation7], %s2313_s17, %s2313_s17, %s2314_s18  }
  0x45   :  { %s2317_s10 = smov [#allocation11]   ;;  %s2318_s13 = smov [#allocation12]  }
  0x46   :  { %s75_s11 = sshll.u32 %s2317_s10, 4  ;;  %s87_s14 = sshll.u32 %s2318_s13, 4  ;;  %s76_s11 = int_to_ptr.vmem [resolvable:$true] %s75_s11  ;;  %s2447_s14 = int_to_ptr.vmem [resolvable:$true] %s87_s14 }
  0x47   :  { %s2235_s19 = scalar_lea.hbm %s2723_s6, 512 }
  0x48   :  { %p2236_p4 = scmp.ne.s32.totalorder %s2723_s6, %s2235_s19  ;;  %p2239_p5 = scmp.lt.u32.totalorder %s2235_s19, %s2723_s6 }
  0x4a   :  { %p2241_p6 = pnand %p2239_p5, %p2236_p4 }
  0x4c   :  { %2244 = shalt.err (!%p2241_p6)
}
  0x4d   :  { %s2245_s3 = scalar_lea.vmem %s76_s11, 512  ;;  %p2250_p8 = scmp.lt.s32.totalorder %s76_s11, %s76_s11 }
  0x4e   :  { %p2246_p7 = scmp.ne.s32.totalorder %s76_s11, %s2245_s3  ;;  %p2251_p9 = scmp.lt.s32.totalorder %s2245_s3, %s2245_s3 }
  0x50   :  { %p2252_p10 = por %p2251_p9, %p2250_p8 }
  0x52   :  { %p2253_p11 = pnand %p2252_p10, %p2246_p7 }
  0x54   :  { %2256 = shalt.err (!%p2253_p11)
}
  0x55   :  { %81 = dma.hbm_to_vmem [thread:$0]  %s2723_s6, 512, %s76_s11, [#allocation10], %s2313_s17, %s2313_s17, %s2314_s18  }
  0x56   :  { %s2257_s25 = scalar_lea.hbm %s2724_s7, 512 }
  0x57   :  { %p2258_p12 = scmp.ne.s32.totalorder %s2724_s7, %s2257_s25  ;;  %p2261_p13 = scmp.lt.u32.totalorder %s2257_s25, %s2724_s7 }
  0x59   :  { %p2263_p0 = pnand %p2261_p13, %p2258_p12 }
  0x5b   :  { %2266 = shalt.err (!%p2263_p0)
}
  0x5c   :  { %s2267_s28 = scalar_lea.vmem %s2447_s14, 512  ;;  %p2272_p2 = scmp.lt.s32.totalorder %s2447_s14, %s2447_s14 }
  0x5d   :  { %p2268_p1 = scmp.ne.s32.totalorder %s2447_s14, %s2267_s28  ;;  %p2273_p3 = scmp.lt.s32.totalorder %s2267_s28, %s2267_s28 }
  0x5f   :  { %p2274_p4 = por %p2273_p3, %p2272_p2 }
  0x61   :  { %p2275_p5 = pnand %p2274_p4, %p2268_p1 }
  0x63   :  { %2278 = shalt.err (!%p2275_p5)
}
  0x64   :  { %93 = dma.hbm_to_vmem [thread:$0]  %s2724_s7, 512, %s2447_s14, [#allocation13], %s2313_s17, %s2313_s17, %s2314_s18  }
  0x65   :  { %2301 = dma.done.wait [#allocation4], 256  }
  0x66   :  { %2302 = vsyncadd [#allocation4], 4294967040 }
  0x67   :  { %2303 = dma.done.wait [#allocation7], 512  }
  0x68   :  { %2304 = vsyncadd [#allocation7], 4294966784 }
  0x69   :  { %2305 = dma.done.wait [#allocation10], 1024  }
  0x6a   :  { %2306 = vsyncadd [#allocation10], 4294966272 }
  0x6b   :  { %2307 = dma.done.wait [#allocation13], 512  }
  0x6c   :  { %2308 = vsyncadd [#allocation13], 4294966784  ;;  %v118_v0 = vld [vmem:[%s2721_s4] sm:$0xff]  ;;  %v119_v1 = vld [vmem:[%s2721_s4 + $0x8] sm:$0xff]  ;;  %vm122_vm0 = vcmask 261120   ;;  %v2319_v16 = vmov 0.0   ;;  %v376_v34 = vlaneseq }
  0x6d   :  { %v206_v2 = vld [vmem:[#allocation9] sm:$0xff]  ;;  %v2065_v3 = vpack.c.bf16 %v119_v1, %v118_v0  ;;  %v207_v4 = vld [vmem:[#allocation9 + $0x8] sm:$0xff]  ;;  %v120_v5 = vld [vmem:[%s2721_s4 + $0x10] sm:$0xff]  ;;  %vm2320_vm1 = vmmov 0   ;;  %v2321_v18 = vmov 0   ;;  %vm388_vm2 = vcmask 64512  }
  0x6e   :  { %v121_v6 = vld [vmem:[%s2721_s4 + $0x18] sm:$0xff]  ;;  %v2073_v7 = vpack.c.bf16 %v207_v4, %v206_v2  ;;  %v208_v9 = vld [vmem:[#allocation9 + $0x10] sm:$0xff]  ;;  %v114_v13 = vld [vmem:[#allocation6] sm:$0xff]  ;;  %2114 = vset.pattern.permute.xlu0 %v2321_v18  ;;  %v2536_v35 = vand.u32 127, %v376_v34  ;;  %s2323_s5 = smov 112   ;;  %s2324_s30 = smov 104  }
  0x6f   :  { %v2069_v8 = vpack.c.bf16 %v121_v6, %v120_v5  ;;  %v209_v10 = vld [vmem:[#allocation9 + $0x18] sm:$0xff]  ;;  %v112_v11 = vld [vmem:[#allocation3] sm:$0xff]  ;;  %2066 = vmatprep.subr.bf16.mxu0 %v2065_v3  ;;  %1960 = vmatprep.mubr.msk.f32.mxu1 %vm122_vm0, %v114_v13  ;;  %v115_v15 = vld [vmem:[#allocation6 + $0x8] sm:$0xff]  ;;  %s2325_s3 = smov 16   ;;  %vm1055_vm5 = vcmask 130112   ;;  %vm1398_vm6 = vcmask 195712  }
  0x70   :  { %v2077_v12 = vpack.c.bf16 %v209_v10, %v208_v9  ;;  %1949 = vmatprep.mubr.msk.f32.mxu0 %vm122_vm0, %v112_v11  ;;  %2074 = vmatprep.subr.bf16.mxu1 %v2073_v7  ;;  %v113_v14 = vld [vmem:[#allocation3 + $0x8] sm:$0xff]  ;;  %v378_v17 = vld [vmem:[%s2717_s0] sm:$0xff]  ;;  %v379_v19 = vld [vmem:[%s2717_s0 + $0x8] sm:$0xff]  ;;  %s2322_s0 = smov 120   ;;  %s2326_s12 = smov 24   ;;  %vm1741_vm7 = vcmask 261312  }
  0x71   :  { %2068 = vmatpush3.bf16.msra.mxu0 %v2065_v3  ;;  %2076 = vmatpush3.bf16.msra.mxu1 %v2073_v7  ;;  %v291_v26 = vld [vmem:[#allocation11] sm:$0xff]  ;;  %v292_v27 = vld [vmem:[#allocation11 + $0x8] sm:$0xff]  ;;  %v293_v28 = vld [vmem:[#allocation11 + $0x10] sm:$0xff]  ;;  %s2327_s22 = smov [#allocation14]  }
  0x72   :  { %2070 = vmatprep.subr.bf16.mxu0 %v2069_v8  ;;  %2078 = vmatprep.subr.bf16.mxu1 %v2077_v12  ;;  %v2081_v29 = vpack.c.bf16 %v292_v27, %v291_v26  ;;  %v294_v30 = vld [vmem:[#allocation11 + $0x18] sm:$0xff]  ;;  %v116_v31 = vld [vmem:[#allocation8] sm:$0xff]  ;;  %s1838_s23 = sshll.u32 %s2327_s22, 4  ;;  %s1839_s23 = int_to_ptr.vmem [resolvable:$true] %s1838_s23 }
  0x73   :  { %381 = vperm.xlu0 %2114, %v378_v17   ;;  %v2085_v32 = vpack.c.bf16 %v294_v30, %v293_v28  ;;  %v117_v33 = vld [vmem:[#allocation8 + $0x8] sm:$0xff]  ;;  %s2279_s24 = scalar_lea.vmem %s1839_s23, 256  ;;  %p2284_p7 = scmp.lt.s32.totalorder %s1839_s23, %s1839_s23 }
  0x74   :  { %p2280_p6 = scmp.ne.s32.totalorder %s1839_s23, %s2279_s24  ;;  %p2285_p8 = scmp.lt.s32.totalorder %s2279_s24, %s2279_s24 }
  0x75   :  { %2072 = vmatpush3.bf16.msra.mxu0 %v2069_v8  ;;  %2080 = vmatpush3.bf16.msra.mxu1 %v2077_v12 }
  0x76   :  { %1974 = vmatprep.subr.mxu1 %v2319_v16  ;;  %2082 = vmatprep.subr.bf16.mxu0 %v2081_v29  ;;  %p2286_p9 = por %p2285_p8, %p2284_p7 }
  0x77   :  { %384 = vperm.xlu0 %2114, %v379_v19  }
  0x78   :  { %1950 = vmatmul.mubr.msk.f32.vlgmr.msra.gmra.mrb[0].mxu0 %vm122_vm0, %v113_v14  ;;  %1961 = vmatmul.mubr.msk.f32.vlgmr.msra.gmra.mrb[0].mxu1 %vm122_vm0, %v115_v15  ;;  %p2287_p10 = pnand %p2286_p9, %p2280_p6 }
  0x79   :  { %1976 = vmatprep.mubr.msk.f32.mxu1 %vm2320_vm1, %v2319_v16  ;;  %1971 = vmatprep.mubr.msk.f32.mxu0 %vm122_vm0, %v116_v31 }
  0x7a   :  { %2084 = vmatpush3.bf16.msra.mxu0 %v2081_v29 }
  0x7b   :  { %2086 = vmatprep.subr.bf16.mxu0 %v2085_v32 }
  0x7e   :  { %2088 = vmatpush3.bf16.msra.mxu0 %v2085_v32 }
  0x7f   :  { %1994 = vmatprep.subr.mxu0 %v2319_v16 }
  0x81   :  { %1972 = vmatmul.mubr.msk.f32.vlgmr.msra.gmra.mrb[2].mxu0 %vm122_vm0, %v117_v33 }
  0x82   :  { %1996 = vmatprep.mubr.msk.f32.mxu0 %vm2320_vm1, %v2319_v16 }
  0xf2   :  { %v2538_v36 = vpop.permute.xlu0 %381 }
  0xf3   :  { %vm386_vm3 = vcmp.lt.s32.totalorder %v2536_v35, %v2538_v36 }
  0xf6   :  { %v2542_v38 = vpop.permute.xlu0 %384 }
  0xf7   :  { %vm387_vm4 = vcmp.lt.s32.totalorder %v2536_v35, %v2542_v38 }
 0x14b   :  { %v1951_v20 = vpop.f32.mrb[0].mxu0  ;;  %v2509_v21 = vpop.f32.mrb[0].mxu1 }
 0x14c   :  { %v195_v22 = vpop.f32.mrb[1].mxu0  ;;  %v2513_v24 = vpop.f32.mrb[1].mxu1  ;;  %v2524_v25 = vmul.f32 0.35355338, %v1951_v20 }
 0x14d   :  { %v2511_v23 = vmul.f32 0.35355338, %v195_v22  ;;  %1975 = vmatpush3.xpose.msk.msra.mxu1 %vm388_vm2, %v2513_v24 }
 0x14e   :  { %1979 = vmatprep.subr.mxu1 %v2319_v16 }
 0x150   :  { %1977 = vmatmul.mubr.msk.f32.vlgmr.msra.gmra.mrb[2].mxu1 %vm388_vm2, %v2511_v23 }
 0x151   :  { %1980 = vmatpush3.xpose.msk.msra.mxu1 %vm388_vm2, %v2509_v21  ;;  %1981 = vmatprep.mubr.msk.f32.mxu1 %vm2320_vm1, %v2319_v16 }
 0x152   :  { %1984 = vmatprep.subr.mxu1 %v2319_v16 }
 0x154   :  { %1982 = vmatmul.mubr.msk.f32.vlgmr.msra.gmra.mrb[4].mxu1 %vm388_vm2, %v2524_v25  ;;  %v2569_v59 = vpop.f32.mrb[2].mxu0 }
 0x155   :  { %1986 = vmatprep.mubr.msk.f32.mxu1 %vm2320_vm1, %v2319_v16  ;;  %v2571_v60 = vpop.f32.mrb[3].mxu0 }
 0x156   :  { %1985 = vmatpush3.msra.mxu1 %v2571_v60 }
 0x157   :  { %1989 = vmatprep.subr.mxu1 %v2319_v16 }
 0x223   :  { %v461_v37 = vpop.f32.mrb[2].mxu1 }
 0x224   :  { %v541_v39 = vsel %vm386_vm3, %v461_v37, -1000000.0  ;;  %v1978_v40 = vpop.f32.mrb[3].mxu1 }
 0x225   :  { %v543_v41 = vsel %vm388_vm2, %v541_v39, -inf }
 0x226   :  { %544 = vmax.xlane.f32.xlu1 %v543_v41 }
 0x227   :  { %v537_v42 = vpop.f32.mrb[4].mxu1 }
 0x228   :  { %v542_v43 = vsel %vm387_vm4, %v537_v42, -1000000.0  ;;  %v1983_v44 = vpop.f32.mrb[5].mxu1 }
 0x229   :  { %v546_v45 = vsel %vm388_vm2, %v542_v43, -inf }
 0x22a   :  { %547 = vmax.xlane.f32.xlu1 %v546_v45 }
 0x23b   :  { %715 = vrot.lane.b32.xlu1 %v2513_v24, %s2322_s0 }
 0x23f   :  { %793 = vrot.lane.b32.xlu1 %v2509_v21, %s2322_s0 }
 0x243   :  { %713 = vrot.lane.b32.xlu1 %v2511_v23, %s2322_s0 }
 0x2b3   :  { %v545_v46 = vpop.xlane.xlu1 %544 }
 0x2b4   :  { %v549_v47 = vsub.f32 %v541_v39, %v545_v46 }
 0x2b6   :  { %v551_v48 = vmul.f32 1.442695, %v549_v47 }
 0x2b7   :  { %v548_v49 = vpop.xlane.xlu1 %547 }
 0x2b8   :  { %2115 = vpow2.f32 %v551_v48  ;;  %v550_v50 = vsub.f32 %v542_v43, %v548_v49 }
 0x2ba   :  { %v553_v51 = vmul.f32 1.442695, %v550_v50 }
 0x2bb   :  { %v716_v52 = vpop.permute.xlu1 %715 }
 0x2bc   :  { %2117 = vpow2.f32 %v553_v51  ;;  %1995 = vmatpush3.xpose.msk.msra.mxu0 %vm388_vm2, %v716_v52 }
 0x2bd   :  { %2004 = vmatprep.subr.mxu0 %v2319_v16 }
 0x2bf   :  { %v794_v53 = vpop.permute.xlu1 %793 }
 0x2c2   :  { %v2116_v54 = vpop.eup %2115 }
 0x2c3   :  { %v714_v55 = vpop.permute.xlu1 %713  ;;  %v555_v56 = vsel %vm388_vm2, %v2116_v54, 0.0 }
 0x2c4   :  { %556 = vadd.xlane.f32.xlu0 %v555_v56  ;;  %1997 = vmatmul.mubr.msk.f32.vlgmr.msra.gmra.mrb[4].mxu0 %vm388_vm2, %v714_v55 }
 0x2c5   :  { %2006 = vmatprep.mubr.msk.f32.mxu0 %vm2320_vm1, %v2319_v16 }
 0x2c6   :  { %v2118_v57 = vpop.eup %2117 }
 0x2c7   :  { %v558_v58 = vsel %vm388_vm2, %v2118_v57, 0.0 }
 0x2c8   :  { %559 = vadd.xlane.f32.xlu1 %v558_v58 }
 0x2d9   :  { %791 = vrot.lane.b32.xlu1 %v2524_v25, %s2322_s0 }
 0x351   :  { %v557_v61 = vpop.xlane.xlu0 %556 }
 0x352   :  { %2119 = vrcp.f32 %v557_v61 }
 0x355   :  { %v560_v62 = vpop.xlane.xlu1 %559 }
 0x356   :  { %2121 = vrcp.f32 %v560_v62 }
 0x359   :  { %v792_v3 = vpop.permute.xlu1 %791 }
 0x35c   :  { %v2120_v63 = vpop.eup %2119 }
 0x35d   :  { %v563_v0 = vmul.f32 %v2120_v63, %v2116_v54 }
 0x35f   :  { %1987 = vmatmul.mubr.msk.f32.vlgmr.msra.gmra.mrb[6].mxu1 %vm388_vm2, %v563_v0 }
 0x360   :  { %v2122_v1 = vpop.eup %2121  ;;  %1990 = vmatpush3.msra.mxu1 %v2569_v59  ;;  %1991 = vmatprep.mubr.msk.f32.mxu1 %vm2320_vm1, %v2319_v16 }
 0x361   :  { %v564_v2 = vmul.f32 %v2122_v1, %v2118_v57  ;;  %1999 = vmatprep.subr.mxu1 %v2319_v16 }
 0x363   :  { %1992 = vmatmul.mubr.msk.f32.vlgmr.msra.gmra.mrb[8].mxu1 %vm388_vm2, %v564_v2 }
 0x364   :  { %2001 = vmatprep.mubr.msk.f32.mxu1 %vm2320_vm1, %v2319_v16 }
 0x367   :  { %2000 = vmatpush3.xpose.msk.msra.mxu1 %vm388_vm2, %v794_v53 }
 0x368   :  { %2009 = vmatprep.subr.mxu1 %v2319_v16 }
 0x36a   :  { %2002 = vmatmul.mubr.msk.f32.vlgmr.msra.gmra.mrb[10].mxu1 %vm388_vm2, %v792_v3 }
 0x36b   :  { %2011 = vmatprep.mubr.msk.f32.mxu1 %vm2320_vm1, %v2319_v16 }
 0x397   :  { %v787_v4 = vpop.f32.mrb[4].mxu0 }
 0x398   :  { %v869_v5 = vsel %vm386_vm3, %v787_v4, -1000000.0  ;;  %v1998_v6 = vpop.f32.mrb[5].mxu0 }
 0x399   :  { %v871_v7 = vsel %vm388_vm2, %v869_v5, -inf }
 0x39a   :  { %872 = vmax.xlane.f32.xlu0 %v871_v7 }
 0x427   :  { %v873_v8 = vpop.xlane.xlu0 %872 }
 0x428   :  { %v877_v9 = vsub.f32 %v869_v5, %v873_v8 }
 0x42a   :  { %v879_v10 = vmul.f32 1.442695, %v877_v9 }
 0x42c   :  { %2123 = vpow2.f32 %v879_v10 }
 0x432   :  { %v634_v11 = vpop.f32.mrb[6].mxu1 }
 0x433   :  { %711 = vst.msk [vmem:[#allocation2] sm:$0xff] %vm388_vm2, %v634_v11  ;;  %v1988_v12 = vpop.f32.mrb[7].mxu1 }
 0x436   :  { %v2124_v13 = vpop.eup %2123  ;;  %v707_v14 = vpop.f32.mrb[8].mxu1 }
 0x437   :  { %712 = vst.msk [vmem:[#allocation2 + $0x8] sm:$0xff] %vm388_vm2, %v707_v14  ;;  %v1993_v15 = vpop.f32.mrb[9].mxu1  ;;  %v883_v17 = vsel %vm388_vm2, %v2124_v13, 0.0 }
 0x438   :  { %884 = vadd.xlane.f32.xlu0 %v883_v17 }
 0x43d   :  { %v865_v18 = vpop.f32.mrb[10].mxu1 }
 0x43e   :  { %v870_v19 = vsel %vm387_vm4, %v865_v18, -1000000.0  ;;  %v2003_v20 = vpop.f32.mrb[11].mxu1 }
 0x43f   :  { %v874_v22 = vsel %vm388_vm2, %v870_v19, -inf }
 0x440   :  { %875 = vmax.xlane.f32.xlu1 %v874_v22 }
 0x44e   :  { %894 = vrot.lane.b32.xlu0 %v2571_v60, %s2322_s0 }
 0x451   :  { %1138 = vrot.lane.b32.xlu1 %v2509_v21, %s2323_s5 }
 0x452   :  { %971 = vrot.lane.b32.xlu0 %v2569_v59, %s2322_s0 }
 0x456   :  { %1060 = vrot.lane.b32.xlu0 %v2513_v24, %s2323_s5 }
 0x45a   :  { %1058 = vrot.lane.b32.xlu0 %v2511_v23, %s2323_s5 }
 0x4c5   :  { %v885_v26 = vpop.xlane.xlu0 %884 }
 0x4c6   :  { %2125 = vrcp.f32 %v885_v26 }
 0x4c9   :  { %v895_v27 = vpop.permute.xlu0 %894 }
 0x4ca   :  { %2005 = vmatpush3.msra.mxu0 %v895_v27 }
 0x4cb   :  { %2014 = vmatprep.subr.mxu0 %v2319_v16 }
 0x4cd   :  { %v876_v28 = vpop.xlane.xlu1 %875  ;;  %v972_v29 = vpop.permute.xlu0 %971 }
 0x4ce   :  { %v878_v30 = vsub.f32 %v870_v19, %v876_v28  ;;  %2010 = vmatpush3.msra.mxu1 %v972_v29 }
 0x4cf   :  { %2019 = vmatprep.subr.mxu1 %v2319_v16 }
 0x4d0   :  { %v2126_v31 = vpop.eup %2125  ;;  %v881_v32 = vmul.f32 1.442695, %v878_v30 }
 0x4d1   :  { %v891_v33 = vmul.f32 %v2126_v31, %v2124_v13  ;;  %v1061_v34 = vpop.permute.xlu0 %1060  ;;  %v1139_v44 = vpop.permute.xlu1 %1138 }
 0x4d2   :  { %2127 = vpow2.f32 %v881_v32 }
 0x4d3   :  { %2007 = vmatmul.mubr.msk.f32.vlgmr.msra.gmra.mrb[6].mxu0 %vm388_vm2, %v891_v33 }
 0x4d4   :  { %2015 = vmatpush3.xpose.msk.msra.mxu0 %vm388_vm2, %v1061_v34  ;;  %2016 = vmatprep.mubr.msk.f32.mxu0 %vm2320_vm1, %v2319_v16 }
 0x4d5   :  { %v1059_v37 = vpop.permute.xlu0 %1058  ;;  %2024 = vmatprep.subr.mxu0 %v2319_v16 }
 0x4d7   :  { %2017 = vmatmul.mubr.msk.f32.vlgmr.msra.gmra.mrb[8].mxu0 %vm388_vm2, %v1059_v37 }
 0x4d8   :  { %2026 = vmatprep.mubr.msk.f32.mxu0 %vm2320_vm1, %v2319_v16 }
 0x4dc   :  { %v2128_v39 = vpop.eup %2127 }
 0x4dd   :  { %v886_v40 = vsel %vm388_vm2, %v2128_v39, 0.0 }
 0x4de   :  { %887 = vadd.xlane.f32.xlu0 %v886_v40 }
 0x4f4   :  { %1136 = vrot.lane.b32.xlu0 %v2524_v25, %s2323_s5 }
 0x56b   :  { %v888_v41 = vpop.xlane.xlu0 %887 }
 0x56c   :  { %2129 = vrcp.f32 %v888_v41 }
 0x56f   :  { %v1137_v45 = vpop.permute.xlu0 %1136 }
 0x576   :  { %v2130_v42 = vpop.eup %2129 }
 0x577   :  { %v892_v43 = vmul.f32 %v2130_v42, %v2128_v39 }
 0x579   :  { %2012 = vmatmul.mubr.msk.f32.vlgmr.msra.gmra.mrb[12].mxu1 %vm388_vm2, %v892_v43 }
 0x57a   :  { %2020 = vmatpush3.xpose.msk.msra.mxu1 %vm388_vm2, %v1139_v44  ;;  %2021 = vmatprep.mubr.msk.f32.mxu1 %vm2320_vm1, %v2319_v16 }
 0x57b   :  { %2029 = vmatprep.subr.mxu1 %v2319_v16 }
 0x57d   :  { %2022 = vmatmul.mubr.msk.f32.vlgmr.msra.gmra.mrb[14].mxu1 %vm388_vm2, %v1137_v45 }
 0x57e   :  { %2031 = vmatprep.mubr.msk.f32.mxu1 %vm2320_vm1, %v2319_v16 }
 0x5a6   :  { %v2630_v46 = vpop.f32.mrb[6].mxu0 }
 0x5a7   :  { %v2008_v47 = vpop.f32.mrb[7].mxu0 }
 0x5aa   :  { %v1132_v48 = vpop.f32.mrb[8].mxu0 }
 0x5ab   :  { %v1214_v49 = vsel %vm386_vm3, %v1132_v48, -1000000.0  ;;  %v2018_v50 = vpop.f32.mrb[9].mxu0 }
 0x5ac   :  { %v1216_v51 = vsel %vm388_vm2, %v1214_v49, -inf }
 0x5ad   :  { %1217 = vmax.xlane.f32.xlu0 %v1216_v51 }
 0x63a   :  { %v1218_v52 = vpop.xlane.xlu0 %1217 }
 0x63b   :  { %v1222_v53 = vsub.f32 %v1214_v49, %v1218_v52 }
 0x63d   :  { %v1224_v54 = vmul.f32 1.442695, %v1222_v53 }
 0x63f   :  { %2131 = vpow2.f32 %v1224_v54  ;;  %v1746_v54 = vld [vmem:[#allocation12] sm:$0xff] }
 0x649   :  { %v2132_v55 = vpop.eup %2131 }
 0x64a   :  { %v1228_v56 = vsel %vm388_vm2, %v2132_v55, 0.0 }
 0x64b   :  { %1229 = vadd.xlane.f32.xlu0 %v1228_v56 }
 0x64c   :  { %v2637_v57 = vpop.f32.mrb[12].mxu1 }
 0x64d   :  { %v2013_v58 = vpop.f32.mrb[13].mxu1 }
 0x64e   :  { %v1749_v58 = vld [vmem:[#allocation12 + $0x18] sm:$0xff] }
 0x650   :  { %v1210_v61 = vpop.f32.mrb[14].mxu1 }
 0x651   :  { %v1215_v62 = vsel %vm387_vm4, %v1210_v61, -1000000.0  ;;  %v2023_v63 = vpop.f32.mrb[15].mxu1 }
 0x652   :  { %v1219_v0 = vsel %vm388_vm2, %v1215_v62, -inf }
 0x653   :  { %1220 = vmax.xlane.f32.xlu1 %v1219_v0 }
 0x661   :  { %1238 = vrot.lane.b32.xlu0 %v2571_v60, %s2323_s5 }
 0x664   :  { %1314 = vrot.lane.b32.xlu1 %v2569_v59, %s2323_s5 }
 0x665   :  { %1481 = vrot.lane.b32.xlu0 %v2509_v21, %s2324_s30 }
 0x668   :  { %1403 = vrot.lane.b32.xlu1 %v2513_v24, %s2324_s30 }
 0x66c   :  { %1401 = vrot.lane.b32.xlu1 %v2511_v23, %s2324_s30 }
 0x6d8   :  { %v1230_v1 = vpop.xlane.xlu0 %1229 }
 0x6d9   :  { %2133 = vrcp.f32 %v1230_v1 }
 0x6dc   :  { %v1239_v2 = vpop.permute.xlu0 %1238 }
 0x6dd   :  { %2025 = vmatpush3.msra.mxu0 %v1239_v2 }
 0x6de   :  { %2034 = vmatprep.subr.mxu0 %v2319_v16 }
 0x6e0   :  { %v1221_v3 = vpop.xlane.xlu1 %1220  ;;  %v1482_v10 = vpop.permute.xlu0 %1481 }
 0x6e1   :  { %v1223_v4 = vsub.f32 %v1215_v62, %v1221_v3 }
 0x6e3   :  { %v2134_v5 = vpop.eup %2133  ;;  %v1226_v6 = vmul.f32 1.442695, %v1223_v4 }
 0x6e4   :  { %v1236_v7 = vmul.f32 %v2134_v5, %v2132_v55  ;;  %v1315_v8 = vpop.permute.xlu1 %1314  ;;  %v1747_v55 = vld [vmem:[#allocation12 + $0x8] sm:$0xff] }
 0x6e5   :  { %2135 = vpow2.f32 %v1226_v6  ;;  %2030 = vmatpush3.msra.mxu1 %v1315_v8  ;;  %v2089_v56 = vpack.c.bf16 %v1747_v55, %v1746_v54 }
 0x6e6   :  { %2027 = vmatmul.mubr.msk.f32.vlgmr.msra.gmra.mrb[10].mxu0 %vm388_vm2, %v1236_v7  ;;  %2039 = vmatprep.subr.mxu1 %v2319_v16 }
 0x6e7   :  { %2036 = vmatprep.mubr.msk.f32.mxu0 %vm2320_vm1, %v2319_v16 }
 0x6e8   :  { %v1404_v21 = vpop.permute.xlu1 %1403 }
 0x6e9   :  { %2035 = vmatpush3.xpose.msk.msra.mxu0 %vm388_vm2, %v1404_v21 }
 0x6ea   :  { %2044 = vmatprep.subr.mxu0 %v2319_v16 }
 0x6ec   :  { %v1402_v23 = vpop.permute.xlu1 %1401 }
 0x6ed   :  { %2037 = vmatmul.mubr.msk.f32.vlgmr.msra.gmra.mrb[12].mxu0 %vm388_vm2, %v1402_v23 }
 0x6ee   :  { %2046 = vmatprep.mubr.msk.f32.mxu0 %vm2320_vm1, %v2319_v16 }
 0x6ef   :  { %v2136_v24 = vpop.eup %2135 }
 0x6f0   :  { %v1231_v9 = vsel %vm388_vm2, %v2136_v24, 0.0 }
 0x6f1   :  { %1232 = vadd.xlane.f32.xlu0 %v1231_v9 }
 0x707   :  { %1479 = vrot.lane.b32.xlu0 %v2524_v25, %s2324_s30 }
 0x77e   :  { %v1233_v11 = vpop.xlane.xlu0 %1232 }
 0x77f   :  { %2137 = vrcp.f32 %v1233_v11 }
 0x782   :  { %v1480_v14 = vpop.permute.xlu0 %1479 }
 0x789   :  { %v2138_v12 = vpop.eup %2137 }
 0x78a   :  { %v1237_v13 = vmul.f32 %v2138_v12, %v2136_v24 }
 0x78c   :  { %2032 = vmatmul.mubr.msk.f32.vlgmr.msra.gmra.mrb[16].mxu1 %vm388_vm2, %v1237_v13 }
 0x78d   :  { %2040 = vmatpush3.xpose.msk.msra.mxu1 %vm388_vm2, %v1482_v10  ;;  %2041 = vmatprep.mubr.msk.f32.mxu1 %vm2320_vm1, %v2319_v16 }
 0x78e   :  { %2049 = vmatprep.subr.mxu1 %v2319_v16 }
 0x790   :  { %2042 = vmatmul.mubr.msk.f32.vlgmr.msra.gmra.mrb[18].mxu1 %vm388_vm2, %v1480_v14 }
 0x791   :  { %2051 = vmatprep.mubr.msk.f32.mxu1 %vm2320_vm1, %v2319_v16 }
 0x7b9   :  { %v1310_v25 = vpop.f32.mrb[10].mxu0 }
 0x7ba   :  { %v2028_v15 = vpop.f32.mrb[11].mxu0 }
 0x7c0   :  { %v1475_v17 = vpop.f32.mrb[12].mxu0 }
 0x7c1   :  { %v1557_v18 = vsel %vm386_vm3, %v1475_v17, -1000000.0  ;;  %v2038_v19 = vpop.f32.mrb[13].mxu0 }
 0x7c2   :  { %v1559_v20 = vsel %vm388_vm2, %v1557_v18, -inf }
 0x7c3   :  { %1560 = vmax.xlane.f32.xlu1 %v1559_v20 }
 0x850   :  { %v1561_v22 = vpop.xlane.xlu1 %1560 }
 0x851   :  { %v1565_v26 = vsub.f32 %v1557_v18, %v1561_v22 }
 0x853   :  { %v1567_v27 = vmul.f32 1.442695, %v1565_v26 }
 0x855   :  { %2139 = vpow2.f32 %v1567_v27 }
 0x85f   :  { %v1386_v28 = vpop.f32.mrb[16].mxu1  ;;  %v2140_v36 = vpop.eup %2139 }
 0x860   :  { %v2033_v29 = vpop.f32.mrb[17].mxu1  ;;  %v1571_v33 = vsel %vm388_vm2, %v2140_v36, 0.0 }
 0x863   :  { %v1553_v30 = vpop.f32.mrb[18].mxu1 }
 0x864   :  { %v1558_v16 = vsel %vm387_vm4, %v1553_v30, -1000000.0  ;;  %v2043_v31 = vpop.f32.mrb[19].mxu1 }
 0x865   :  { %v1562_v32 = vsel %vm388_vm2, %v1558_v16, -inf }
 0x866   :  { %1563 = vmax.xlane.f32.xlu0 %v1562_v32 }
 0x86a   :  { %1572 = vadd.xlane.f32.xlu0 %v1571_v33 }
 0x880   :  { %1581 = vrot.lane.b32.xlu0 %v2571_v60, %s2324_s30 }
 0x884   :  { %1051 = vrot.lane.b32.xlu0 %v2637_v57, %s2314_s18  ;;  %v1748_v57 = vld [vmem:[#allocation12 + $0x10] sm:$0xff] }
 0x885   :  { %v2093_v61 = vpack.c.bf16 %v1749_v58, %v1748_v57 }
 0x888   :  { %1394 = vrot.lane.b32.xlu0 %v1386_v28, %s2325_s3 }
 0x8f3   :  { %v1564_v34 = vpop.xlane.xlu0 %1563 }
 0x8f4   :  { %v1566_v37 = vsub.f32 %v1558_v16, %v1564_v34 }
 0x8f6   :  { %v1569_v35 = vmul.f32 1.442695, %v1566_v37 }
 0x8f7   :  { %v1573_v38 = vpop.xlane.xlu0 %1572 }
 0x8f8   :  { %2141 = vpow2.f32 %v1569_v35 }
 0x8f9   :  { %2143 = vrcp.f32 %v1573_v38 }
 0x8fb   :  { %v1582_v39 = vpop.permute.xlu0 %1581 }
 0x8fc   :  { %2045 = vmatpush3.msra.mxu0 %v1582_v39 }
 0x8fd   :  { %2090 = vmatprep.subr.bf16.mxu0 %v2089_v56 }
 0x8ff   :  { %v1052_v40 = vpop.permute.xlu0 %1051 }
 0x900   :  { %1057 = vst.msk [vmem:[#allocation2 + $0x8] sm:$0xff] %vm1055_vm5, %v1052_v40 }
 0x902   :  { %v2142_v41 = vpop.eup %2141 }
 0x903   :  { %v2144_v60 = vpop.eup %2143  ;;  %v1395_v42 = vpop.permute.xlu0 %1394  ;;  %v1574_v43 = vsel %vm388_vm2, %v2142_v41, 0.0 }
 0x904   :  { %v1579_v44 = vmul.f32 %v2144_v60, %v2140_v36  ;;  %1400 = vst.msk [vmem:[#allocation2 + $0x8] sm:$0xff] %vm1398_vm6, %v1395_v42  ;;  %1575 = vadd.xlane.f32.xlu1 %v1574_v43 }
 0x906   :  { %2047 = vmatmul.mubr.msk.f32.vlgmr.msra.gmra.mrb[14].mxu0 %vm388_vm2, %v1579_v44 }
 0x907   :  { %2092 = vmatpush3.bf16.msra.mxu0 %v2089_v56 }
 0x908   :  { %2094 = vmatprep.subr.bf16.mxu0 %v2093_v61 }
 0x90b   :  { %2096 = vmatpush3.bf16.msra.mxu0 %v2093_v61 }
 0x915   :  { %1657 = vrot.lane.b32.xlu1 %v2569_v59, %s2324_s30 }
 0x919   :  { %1049 = vrot.lane.b32.xlu1 %v2630_v46, %s2314_s18 }
 0x91d   :  { %1392 = vrot.lane.b32.xlu1 %v1310_v25, %s2325_s3 }
 0x991   :  { %v1576_v45 = vpop.xlane.xlu1 %1575 }
 0x992   :  { %2145 = vrcp.f32 %v1576_v45 }
 0x995   :  { %v1658_v47 = vpop.permute.xlu1 %1657 }
 0x996   :  { %2050 = vmatpush3.msra.mxu1 %v1658_v47 }
 0x999   :  { %v1050_v48 = vpop.permute.xlu1 %1049 }
 0x99a   :  { %1056 = vst.msk [vmem:[#allocation2] sm:$0xff] %vm1055_vm5, %v1050_v48 }
 0x99c   :  { %v2146_v49 = vpop.eup %2145 }
 0x99d   :  { %v1580_v50 = vmul.f32 %v2146_v49, %v2142_v41  ;;  %v1393_v51 = vpop.permute.xlu1 %1392 }
 0x99e   :  { %1399 = vst.msk [vmem:[#allocation2] sm:$0xff] %vm1398_vm6, %v1393_v51 }
 0x99f   :  { %2052 = vmatmul.mubr.msk.f32.vlgmr.msra.gmra.mrb[20].mxu1 %vm388_vm2, %v1580_v50 }
 0x9d9   :  { %v1653_v52 = vpop.f32.mrb[14].mxu0 }
 0x9da   :  { %1735 = vrot.lane.b32.xlu1 %v1653_v52, %s2326_s12  ;;  %v2048_v59 = vpop.f32.mrb[15].mxu0 }
 0xa4c   :  { %v1736_v46 = vpop.permute.xlu1 %1735 }
 0xa4d   :  { %1742 = vst.msk [vmem:[#allocation2] sm:$0xff] %vm1741_vm7, %v1736_v46 }
 0xa54   :  { %v1744_v53 = vld [vmem:[#allocation2] sm:$0xff] }
 0xa55   :  { %2062 = vmatprep.mubr.msk.f32.mxu0 %vm122_vm0, %v1744_v53 }
 0xa72   :  { %v1729_v62 = vpop.f32.mrb[20].mxu1 }
 0xa73   :  { %1737 = vrot.lane.b32.xlu0 %v1729_v62, %s2326_s12  ;;  %v2053_v63 = vpop.f32.mrb[21].mxu1 }
 0xae5   :  { %v1738_v0 = vpop.permute.xlu0 %1737 }
 0xae6   :  { %1743 = vst.msk [vmem:[#allocation2 + $0x8] sm:$0xff] %vm1741_vm7, %v1738_v0 }
 0xaed   :  { %v1745_v1 = vld [vmem:[#allocation2 + $0x8] sm:$0xff] }
 0xaee   :  { %2063 = vmatmul.mubr.msk.f32.vlgmr.msra.gmra.mrb[16].mxu0 %vm122_vm0, %v1745_v1 }
 0xbc1   :  { %v2064_v2 = vpop.f32.mrb[16].mxu0 }
 0xbc2   :  { %1832 = vst [vmem:[#allocation14 + $0x8] sm:$0xff] %v2064_v2  ;;  %v1822_v3 = vpop.f32.mrb[17].mxu0 }
 0xbc3   :  { %1831 = vst [vmem:[#allocation14] sm:$0xff] %v1822_v3 }
 0xbc4   :  { %2290 = shalt.err (!%p2287_p10)
}
 0xbc5   :  { %s2291_s27 = scalar_lea.hbm %s2725_s8, 256 }
 0xbc6   :  { %p2292_p11 = scmp.ne.s32.totalorder %s2725_s8, %s2291_s27  ;;  %p2295_p12 = scmp.lt.u32.totalorder %s2291_s27, %s2725_s8 }
 0xbc8   :  { %p2297_p13 = pnand %p2295_p12, %p2292_p11 }
 0xbca   :  { %2300 = shalt.err (!%p2297_p13)
}
 0xbcb   :  { %1844 = dma.vmem_to_hbm [thread:$0]  %s1839_s23, 256, %s2725_s8, [#allocation5], %s2313_s17, %s2313_s17, %s2314_s18  }
 0xbcc   :  { %2309 = dma.done.wait [#allocation5], 256  }
 0xbcd   :  { %2310 = vsyncadd [#allocation5], 4294967040 }
 0xbce   :  { %1848 = vsyncpa [#allocation4], 1 }
 0xbcf   :  { %1849 = vsyncpa [#allocation7], 1 }
 0xbd0   :  { %1850 = vsyncpa [#allocation10], 1 }
 0xbd1   :  { %1851 = vsyncpa [#allocation13], 1 }
 0xbd2   :  { %1852 = vsyncpa [#allocation5], 1 }

</bundles_post_ra>
